<compile_context>
chip_gen: v5e
topology: v5e:2x2
jax: 0.10.0
libtpu: 0.0.40
codegen_flags: <defaults>
</compile_context>

<pallas_src>
import functools

import jax
import jax.numpy as jnp
from jax.experimental import pallas as pl
from jax.experimental.pallas import tpu as pltpu

BN_EPS = 1e-5
TILE_M = 512     # im2col rows per tile; every tile here fits VMEM with wide margin


def _round_up(x, m):
    return (x + m - 1) // m * m


# ---------------------------------------------------------------------------
# Pallas kernels
# ---------------------------------------------------------------------------
def _matmul_stats_kernel(p_ref, w_ref, o_ref, stat_ref):
    """Conv-as-matmul (bf16 MXU operands, f32 accumulate) + per-block BN partial stats.

    grid = (nm,). Full K per block (no accumulation axis). stats block is
    [1, 2, Cpad]: row 0 = sum over rows, row 1 = sum of squares (from f32 acc).
    """
    acc = jnp.dot(p_ref[...], w_ref[...], preferred_element_type=jnp.float32)
    o_ref[...] = acc.astype(o_ref.dtype)                       # bf16 store
    s = jnp.sum(acc, axis=0, keepdims=True)
    sq = jnp.sum(acc * acc, axis=0, keepdims=True)
    stat_ref[...] = jnp.concatenate([s, sq], axis=0)[None]     # (1, 2, Cpad)


def _bn_act_kernel(x_ref, stat_ref, g_ref, b_ref, o_ref, *, inv_m, relu):
    """BN apply (y = x*scale + shift) + optional ReLU. f32 math, bf16 in/out."""
    st = stat_ref[...]
    mean = st[0:1, :] * inv_m
    var = jnp.maximum(st[1:2, :] * inv_m - mean * mean, 0.0)   # biased variance
    scale = g_ref[...] * jax.lax.rsqrt(var + BN_EPS)
    shift = b_ref[...] - mean * scale
    y = x_ref[...].astype(jnp.float32) * scale + shift
    if relu:
        y = jnp.maximum(y, 0.0)
    o_ref[...] = y.astype(o_ref.dtype)


def _bn_res_relu_kernel(x_ref, stat_ref, g_ref, b_ref, r_ref, o_ref, *, inv_m):
    """BN apply + residual add + ReLU. f32 math, bf16 in/out."""
    st = stat_ref[...]
    mean = st[0:1, :] * inv_m
    var = jnp.maximum(st[1:2, :] * inv_m - mean * mean, 0.0)
    scale = g_ref[...] * jax.lax.rsqrt(var + BN_EPS)
    shift = b_ref[...] - mean * scale
    y = (x_ref[...].astype(jnp.float32) * scale + shift
         + r_ref[...].astype(jnp.float32))
    o_ref[...] = jnp.maximum(y, 0.0).astype(o_ref.dtype)


def _pool_fc_kernel(x_ref, w_ref, b_ref, o_ref):
    """Adaptive-avg-pool (mean folded into the FC weight) + Linear head (MXU)."""
    feat = jnp.sum(x_ref[...].astype(jnp.float32), axis=1)     # (N, C)
    o_ref[...] = (jnp.dot(feat.astype(jnp.bfloat16), w_ref[...],
                          preferred_element_type=jnp.float32)
                  + b_ref[...]).astype(o_ref.dtype)


# ---------------------------------------------------------------------------
# Plain-JAX glue: im2col + conv wrapper
# ---------------------------------------------------------------------------
def _im2col(x, ksize, stride, padding):
    """x: NHWC (bf16) -> patches [N*Ho*Wo, k*k*Cin] with K ordered (kh, kw, ci).

    No transpose of the big patch tensor; the (tiny) weight is permuted to match.
    """
    n, h, w, c = x.shape
    ho = (h + 2 * padding - ksize) // stride + 1
    wo = (w + 2 * padding - ksize) // stride + 1
    xp = jnp.pad(x, ((0, 0), (padding, padding), (padding, padding), (0, 0)))
    cols = []
    for kh in range(ksize):
        for kw in range(ksize):
            cols.append(xp[:, kh:kh + stride * ho:stride, kw:kw + stride * wo:stride, :])
    p = jnp.concatenate(cols, axis=-1)          # [N, Ho, Wo, k*k*C], (kh,kw,ci) order
    return p.reshape(n * ho * wo, c * ksize * ksize), ho, wo


def conv_bn(x, w, gamma, beta, *, stride=1, ksize=3, padding=1, relu=True, residual=None):
    """x: NHWC (any float dtype), w: PyTorch layout [Cout, Cin, kh, kw]. Returns NHWC bf16."""
    n = x.shape[0]
    cout = w.shape[0]

    x = x.astype(jnp.bfloat16)                  # bf16 before im2col: halves HBM traffic
    patches, ho, wo = _im2col(x, ksize, stride, padding)
    m, k = patches.shape

    k_pad = _round_up(k, 128)
    cout_pad = _round_up(cout, 128)             # lane-dense stores for 32/64-ch layers
    tm = TILE_M if m >= TILE_M else _round_up(m, 16)   # 16: native bf16 sublane packing
    m_pad = _round_up(m, tm)
    nm = m_pad // tm

    patches_p = jnp.pad(patches, ((0, m_pad - m), (0, k_pad - k)))
    # weight permuted to (kh, kw, cin, cout) -> flat K matches patch ordering
    wmat = jnp.transpose(w, (2, 3, 1, 0)).reshape(k, cout)
    wmat_p = jnp.pad(wmat, ((0, k_pad - k), (0, cout_pad - cout))).astype(jnp.bfloat16)

    conv_out, stats_part = pl.pallas_call(
        _matmul_stats_kernel,
        grid=(nm,),
        in_specs=[pl.BlockSpec((tm, k_pad), lambda i: (i, 0)),
                  pl.BlockSpec((k_pad, cout_pad), lambda i: (0, 0))],
        out_specs=[pl.BlockSpec((tm, cout_pad), lambda i: (i, 0)),
                   pl.BlockSpec((1, 2, cout_pad), lambda i: (i, 0, 0))],
        out_shape=[jax.ShapeDtypeStruct((m_pad, cout_pad), jnp.bfloat16),
                   jax.ShapeDtypeStruct((nm, 2, cout_pad), jnp.float32)],
        compiler_params=pltpu.CompilerParams(
            dimension_semantics=("parallel",)),
    )(patches_p, wmat_p)

    # Fold per-block partial stats (tiny XLA reduce keeps the grid race-free/parallel).
    stats = jnp.sum(stats_part, axis=0)                         # [2, cout_pad] f32

    g = jnp.pad(gamma.astype(jnp.float32), (0, cout_pad - cout),
                constant_values=1.0).reshape(1, cout_pad)
    b = jnp.pad(beta.astype(jnp.float32), (0, cout_pad - cout)).reshape(1, cout_pad)
    inv_m = 1.0 / float(m)          # real row count -> exact batch statistics

    row_spec = pl.BlockSpec((tm, cout_pad), lambda i: (i, 0))
    bcast_specs = [pl.BlockSpec((2, cout_pad), lambda i: (0, 0)),
                   pl.BlockSpec((1, cout_pad), lambda i: (0, 0)),
                   pl.BlockSpec((1, cout_pad), lambda i: (0, 0))]

    if residual is None:
        y = pl.pallas_call(
            functools.partial(_bn_act_kernel, inv_m=inv_m, relu=relu),
            grid=(nm,),
            in_specs=[row_spec] + bcast_specs,
            out_specs=row_spec,
            out_shape=jax.ShapeDtypeStruct((m_pad, cout_pad), jnp.bfloat16),
            compiler_params=pltpu.CompilerParams(dimension_semantics=("parallel",)),
        )(conv_out, stats, g, b)
    else:
        r = jnp.pad(residual.reshape(m, cout).astype(jnp.bfloat16),
                    ((0, m_pad - m), (0, cout_pad - cout)))
        y = pl.pallas_call(
            functools.partial(_bn_res_relu_kernel, inv_m=inv_m),
            grid=(nm,),
            in_specs=[row_spec] + bcast_specs + [row_spec],
            out_specs=row_spec,
            out_shape=jax.ShapeDtypeStruct((m_pad, cout_pad), jnp.bfloat16),
            compiler_params=pltpu.CompilerParams(dimension_semantics=("parallel",)),
        )(conv_out, stats, g, b, r)

    return y[:m, :cout].reshape(n, ho, wo, cout)


def basic_block(x, p):
    stride = p["stride"]
    if "down_w" in p:
        identity = conv_bn(x, p["down_w"], p["down_g"], p["down_b"],
                           stride=stride, ksize=1, padding=0, relu=False)
    else:
        identity = x
    out = conv_bn(x, p["w1"], p["g1"], p["b1"], stride=stride, relu=True)
    # conv2 + bn2 + residual add + relu fused into one epilogue kernel
    out = conv_bn(out, p["w2"], p["g2"], p["b2"], stride=1, relu=False, residual=identity)
    return out


def medium_resnet_forward(params, x_nchw):
    x = jnp.transpose(x_nchw, (0, 2, 3, 1)).astype(jnp.bfloat16)   # NCHW -> NHWC
    x = conv_bn(x, params["conv1_w"], params["bn1_g"], params["bn1_b"], stride=1, relu=True)
    for blocks in params["layers"]:
        for p in blocks:
            x = basic_block(x, p)
    n, h, w, c = x.shape
    num_classes = params["fc_w"].shape[1]
    # avgpool mean folded into the FC weight (scaled once, cast bf16 for the MXU)
    w_fc = (params["fc_w"] * (1.0 / float(h * w))).astype(jnp.bfloat16)
    out = pl.pallas_call(
        _pool_fc_kernel,
        out_shape=jax.ShapeDtypeStruct((n, num_classes), jnp.float32),
        in_specs=[pl.BlockSpec(memory_space=pltpu.MemorySpace.VMEM)] * 3,
        out_specs=pl.BlockSpec(memory_space=pltpu.MemorySpace.VMEM),
    )(x.reshape(n, h * w, c), w_fc, params["fc_b"].astype(jnp.float32))
    return out


# ---------------------------------------------------------------------------
# Deterministic parameter initialization (shapes follow MediumResNet.__init__)
# ---------------------------------------------------------------------------
def init_params(key, num_classes=10):
    keys = iter(jax.random.split(key, 64))

    def conv_w(k, cout, cin, ks):
        fan_in = cin * ks * ks
        return jax.random.normal(k, (cout, cin, ks, ks), jnp.float32) * (2.0 / fan_in) ** 0.5

    params = {
        "conv1_w": conv_w(next(keys), 32, 3, 3),
        "bn1_g": jnp.ones((32,), jnp.float32),
        "bn1_b": jnp.zeros((32,), jnp.float32),
    }

    layers = []
    in_ch = 32
    for out_ch, layer_stride in [(32, 1), (64, 2), (128, 2), (256, 2)]:
        blocks = []
        for bi in range(2):
            s = layer_stride if bi == 0 else 1
            p = {
                "stride": s,
                "w1": conv_w(next(keys), out_ch, in_ch, 3),
                "g1": jnp.ones((out_ch,), jnp.float32),
                "b1": jnp.zeros((out_ch,), jnp.float32),
                "w2": conv_w(next(keys), out_ch, out_ch, 3),
                "g2": jnp.ones((out_ch,), jnp.float32),
                "b2": jnp.zeros((out_ch,), jnp.float32),
            }
            if s != 1 or in_ch != out_ch:
                p["down_w"] = conv_w(next(keys), out_ch, in_ch, 1)
                p["down_g"] = jnp.ones((out_ch,), jnp.float32)
                p["down_b"] = jnp.zeros((out_ch,), jnp.float32)
            blocks.append(p)
            in_ch = out_ch
        layers.append(blocks)
    params["layers"] = layers

    params["fc_w"] = jax.random.normal(next(keys), (256, num_classes), jnp.float32) * (1.0 / 256.0) ** 0.5
    params["fc_b"] = jnp.zeros((1, num_classes), jnp.float32)
    return params


if __name__ == "__main__":
    key = jax.random.PRNGKey(0)
    pkey, xkey = jax.random.split(key)
    params = init_params(pkey, num_classes=10)
    # small input consistent with the module: NCHW, 3 input channels
    x = jax.random.normal(xkey, (2, 3, 16, 16), jnp.float32)
    out = medium_resnet_forward(params, x)
    out = jax.block_until_ready(out)
    assert out.shape == (2, 10), out.shape
    assert bool(jnp.all(jnp.isfinite(out)))
    print("KERNEL_OK")
</pallas_src>

<mosaic_0001>
module attributes {stable_mosaic.version = 11 : i64} {
  func.func @_matmul_stats_kernel(%arg0: i32, %arg1: memref<512x128xbf16, #tpu.memory_space<vmem>>, %arg2: memref<128x128xbf16, #tpu.memory_space<vmem>>, %arg3: memref<512x128xbf16, #tpu.memory_space<vmem>>, %arg4: memref<1x2x128xf32, #tpu.memory_space<vmem>>) attributes {dimension_semantics = [#tpu.dimension_semantics<parallel>], iteration_bounds = array<i64: 1>, scalar_prefetch = 0 : i64, scratch_operands = 0 : i64, tpu.core_type = #tpu.core_type<tc>, window_params = [{transform_indices = @transform_0, window_bounds = array<i64: 512, 128>}, {pipeline_mode = #tpu.pipeline_mode<synchronous>, transform_indices = @transform_1, window_bounds = array<i64: 128, 128>}, {transform_indices = @transform_2, window_bounds = array<i64: 512, 128>}, {transform_indices = @transform_3, window_bounds = array<i64: 1, 2, 128>}]} {
    %c0 = arith.constant 0 : index
    %c0_0 = arith.constant 0 : index
    %0 = vector.load %arg1[%c0, %c0_0] : memref<512x128xbf16, #tpu.memory_space<vmem>>, vector<512x128xbf16>
    %c0_1 = arith.constant 0 : index
    %c0_2 = arith.constant 0 : index
    %1 = vector.load %arg2[%c0_1, %c0_2] : memref<128x128xbf16, #tpu.memory_space<vmem>>, vector<128x128xbf16>
    %cst = arith.constant dense<0.000000e+00> : vector<512x128xf32>
    %2 = tpu.matmul %0, %1, %cst {dimension_numbers = #tpu.dot_dimension_numbers<[1], [0], [0], [1], [0, 0, 1, 1], [], []>} : vector<512x128xbf16>, vector<128x128xbf16>, vector<512x128xf32> -> vector<512x128xf32>
    %3 = arith.truncf %2 : vector<512x128xf32> to vector<512x128xbf16>
    %c0_3 = arith.constant 0 : index
    %c0_4 = arith.constant 0 : index
    %4 = vector.load %arg3[%c0_3, %c0_4] : memref<512x128xbf16, #tpu.memory_space<vmem>>, vector<512x128xbf16>
    tpu.vector_store %arg3[%c0_3, %c0_4], %3 {strides = array<i32>} : memref<512x128xbf16, #tpu.memory_space<vmem>>, vector<512x128xbf16>,
    %cst_5 = arith.constant dense<0.000000e+00> : vector<128xf32>
    %5 = vector.multi_reduction <add>, %2, %cst_5 [0] : vector<512x128xf32> to vector<128xf32>
    %6 = vector.shape_cast %5 : vector<128xf32> to vector<1x128xf32>
    %7 = arith.mulf %2, %2 : vector<512x128xf32>
    %cst_6 = arith.constant dense<0.000000e+00> : vector<128xf32>
    %8 = vector.multi_reduction <add>, %7, %cst_6 [0] : vector<512x128xf32> to vector<128xf32>
    %9 = vector.shape_cast %8 : vector<128xf32> to vector<1x128xf32>
    %10 = tpu.concatenate %6, %9 in 0 : vector<1x128xf32>, vector<1x128xf32> -> vector<2x128xf32>
    %11 = vector.shape_cast %10 : vector<2x128xf32> to vector<1x2x128xf32>
    %c0_7 = arith.constant 0 : index
    %c0_8 = arith.constant 0 : index
    %c0_9 = arith.constant 0 : index
    %12 = vector.load %arg4[%c0_7, %c0_8, %c0_9] : memref<1x2x128xf32, #tpu.memory_space<vmem>>, vector<1x2x128xf32>
    tpu.vector_store %arg4[%c0_7, %c0_8, %c0_9], %11 {strides = array<i32>} : memref<1x2x128xf32, #tpu.memory_space<vmem>>, vector<1x2x128xf32>,
    return
  }
  func.func @transform_0(%arg0: i32) -> (i32, i32) {
    %c0_i32 = arith.constant 0 : i32
    %c0_i32_0 = arith.constant 0 : i32
    return %arg0, %c0_i32 : i32, i32
  }
  func.func @transform_1(%arg0: i32) -> (i32, i32) {
    %c0_i32 = arith.constant 0 : i32
    %c0_i32_0 = arith.constant 0 : i32
    %c0_i32_1 = arith.constant 0 : i32
    return %c0_i32, %c0_i32_0 : i32, i32
  }
  func.func @transform_2(%arg0: i32) -> (i32, i32) {
    %c0_i32 = arith.constant 0 : i32
    %c0_i32_0 = arith.constant 0 : i32
    return %arg0, %c0_i32 : i32, i32
  }
  func.func @transform_3(%arg0: i32) -> (i32, i32, i32) {
    %c0_i32 = arith.constant 0 : i32
    %c0_i32_0 = arith.constant 0 : i32
    %c0_i32_1 = arith.constant 0 : i32
    return %arg0, %c0_i32, %c0_i32_0 : i32, i32, i32
  }
}

</mosaic_0001>

<bundles_post_ra>
// kernel: tpu_custom_call.1
= control target key start
LH: loop header
LB: loop body
LE: loop exit
PB: predicated region body
PF: predicated region fallthrough
CT: control target
= control target key end

     0   :  { %9 = vsyncpa [#allocation3], 0  ;;  %s1771_s0 = inlined_call_operand.hbm [shape: bf16[512,128], index: 0, kind: input, shape index: {}]   ;;  %s1772_s1 = inlined_call_operand.hbm [shape: bf16[128,128], index: 1, kind: input, shape index: {}]   ;;  %s1773_s2 = inlined_call_operand.hbm [shape: bf16[512,128], index: 2, kind: output, shape index: {0}]   ;;  %s1774_s3 = inlined_call_operand.hbm [shape: f32[1,2,128], index: 3, kind: output, shape index: {1}]  }
   0x1   :  { %10 = vsyncpa [#allocation6], 0 }
   0x2   :  { %11 = vsyncpa [#allocation4], 0 }
   0x3   :  { %12 = vsyncpa [#allocation9], 0  ;;  %s17_s14 = sshll.u32 %s1771_s0, 4  ;;  %s1430_s15 = smov [#allocation2]   ;;  %s18_s14 = int_to_ptr.hbm [resolvable:$true] %s17_s14 }
   0x4   :  { %s19_s16 = sshll.u32 %s1430_s15, 4  ;;  %s30_s19 = sshll.u32 %s1772_s1, 4  ;;  %s20_s16 = int_to_ptr.vmem [resolvable:$true] %s19_s16  ;;  %s31_s19 = int_to_ptr.hbm [resolvable:$true] %s30_s19 }
   0x5   :  { %s1431_s20 = smov 64   ;;  %s1432_s21 = smov 4  }
   0x6   :  { %25 = dma.hbm_to_vmem [thread:$0]  %s18_s14, 4096, %s20_s16, [#allocation3], %s1431_s20, %s1431_s20, %s1432_s21  }
   0x7   :  { %s1433_s22 = smov [#allocation5]  }
   0x8   :  { %s32_s23 = sshll.u32 %s1433_s22, 4  ;;  %s33_s23 = int_to_ptr.vmem [resolvable:$true] %s32_s23 }
   0x9   :  { %38 = dma.hbm_to_vmem [thread:$0]  %s31_s19, 1024, %s33_s23, [#allocation6], %s1431_s20, %s1431_s20, %s1432_s21  }
   0xa   :  { %1422 = dma.done.wait [#allocation3], 4096  }
   0xb   :  { %1423 = vsyncadd [#allocation3], 4294963200 }
   0xc   :  { %1424 = dma.done.wait [#allocation6], 1024  }
   0xd   :  { %1425 = vsyncadd [#allocation6], 4294966272  ;;  %v1104_v0 = vld [vmem:[#allocation5 + $0x38] sm:$0xff]  ;;  %v1103_v1 = vld [vmem:[#allocation5 + $0x30] sm:$0xff]  ;;  %s1434_s0 = smov [#allocation7]   ;;  %s875_s26 = sshll.u32 %s1773_s2, 4  ;;  %s876_s26 = int_to_ptr.hbm [resolvable:$true] %s875_s26 }
   0xe   :  { %367 = vmatpush.bf16.msra.mxu0 %v1104_v0  ;;  %1296 = vmatpush.bf16.msra.mxu1 %v1104_v0  ;;  %v1102_v2 = vld [vmem:[#allocation5 + $0x28] sm:$0xff]  ;;  %v1101_v3 = vld [vmem:[#allocation5 + $0x20] sm:$0xff]  ;;  %v1100_v4 = vld [vmem:[#allocation5 + $0x18] sm:$0xff]  ;;  %s873_s1 = sshll.u32 %s1434_s0, 4  ;;  %s1435_s2 = smov [#allocation8]   ;;  %vm866_vm0 = vcmask 1040384   ;;  %s874_s1 = int_to_ptr.vmem [resolvable:$true] %s873_s1 }
   0xf   :  { %1297 = vmatpush.bf16.msra.mxu2 %v1104_v0  ;;  %1298 = vmatpush.bf16.msra.mxu3 %v1104_v0  ;;  %v1099_v5 = vld [vmem:[#allocation5 + $0x10] sm:$0xff]  ;;  %v1098_v6 = vld [vmem:[#allocation5 + $0x8] sm:$0xff]  ;;  %v1097_v7 = vld [vmem:[#allocation5] sm:$0xff]  ;;  %s887_s27 = sshll.u32 %s1435_s2, 4  ;;  %s889_s30 = sshll.u32 %s1774_s3, 4  ;;  %s888_s27 = int_to_ptr.vmem [resolvable:$true] %s887_s27  ;;  %s890_s30 = int_to_ptr.hbm [resolvable:$true] %s889_s30 }
  0x10   :  { %v1065_v8 = vld [vmem:[#allocation2] sm:$0xff]  ;;  %v1066_v10 = vld [vmem:[#allocation2 + $0x8] sm:$0xff]  ;;  %v1067_v13 = vld [vmem:[#allocation2 + $0x10] sm:$0xff] }
  0x11   :  { %v1073_v9 = vld [vmem:[#allocation2 + $0x40] sm:$0xff]  ;;  %v1074_v11 = vld [vmem:[#allocation2 + $0x48] sm:$0xff]  ;;  %v1075_v14 = vld [vmem:[#allocation2 + $0x50] sm:$0xff] }
  0x12   :  { %368 = vmatpush.bf16.msra.mxu0 %v1103_v1  ;;  %1299 = vmatpush.bf16.msra.mxu1 %v1103_v1  ;;  %v1081_v12 = vld [vmem:[#allocation2 + $0x80] sm:$0xff]  ;;  %v1082_v15 = vld [vmem:[#allocation2 + $0x88] sm:$0xff]  ;;  %v1068_v16 = vld [vmem:[#allocation2 + $0x18] sm:$0xff] }
  0x13   :  { %1300 = vmatpush.bf16.msra.mxu2 %v1103_v1  ;;  %1301 = vmatpush.bf16.msra.mxu3 %v1103_v1  ;;  %v1076_v17 = vld [vmem:[#allocation2 + $0x58] sm:$0xff]  ;;  %v1083_v18 = vld [vmem:[#allocation2 + $0x90] sm:$0xff]  ;;  %v1089_v19 = vld [vmem:[#allocation2 + $0xc0] sm:$0xff] }
  0x14   :  { %v1069_v20 = vld [vmem:[#allocation2 + $0x20] sm:$0xff]  ;;  %v1084_v22 = vld [vmem:[#allocation2 + $0x98] sm:$0xff]  ;;  %v1090_v23 = vld [vmem:[#allocation2 + $0xc8] sm:$0xff] }
  0x15   :  { %v1077_v21 = vld [vmem:[#allocation2 + $0x60] sm:$0xff]  ;;  %v1070_v24 = vld [vmem:[#allocation2 + $0x28] sm:$0xff]  ;;  %v1091_v27 = vld [vmem:[#allocation2 + $0xd0] sm:$0xff] }
  0x16   :  { %369 = vmatpush.bf16.msra.mxu0 %v1102_v2  ;;  %1302 = vmatpush.bf16.msra.mxu1 %v1102_v2  ;;  %v1078_v25 = vld [vmem:[#allocation2 + $0x68] sm:$0xff]  ;;  %v1085_v26 = vld [vmem:[#allocation2 + $0xa0] sm:$0xff]  ;;  %v1071_v28 = vld [vmem:[#allocation2 + $0x30] sm:$0xff] }
  0x17   :  { %1303 = vmatpush.bf16.msra.mxu2 %v1102_v2  ;;  %1304 = vmatpush.bf16.msra.mxu3 %v1102_v2  ;;  %v1079_v29 = vld [vmem:[#allocation2 + $0x70] sm:$0xff]  ;;  %v1086_v30 = vld [vmem:[#allocation2 + $0xa8] sm:$0xff]  ;;  %v1092_v31 = vld [vmem:[#allocation2 + $0xd8] sm:$0xff] }
  0x18   :  { %v1072_v32 = vld [vmem:[#allocation2 + $0x38] sm:$0xff]  ;;  %v1087_v34 = vld [vmem:[#allocation2 + $0xb0] sm:$0xff]  ;;  %v1093_v35 = vld [vmem:[#allocation2 + $0xe0] sm:$0xff] }
  0x19   :  { %v1080_v33 = vld [vmem:[#allocation2 + $0x78] sm:$0xff]  ;;  %v1094_v39 = vld [vmem:[#allocation2 + $0xe8] sm:$0xff]  ;;  %v1095_v53 = vld [vmem:[#allocation2 + $0xf0] sm:$0xff] }
  0x1a   :  { %370 = vmatpush.bf16.msra.mxu0 %v1101_v3  ;;  %1305 = vmatpush.bf16.msra.mxu1 %v1101_v3  ;;  %v1088_v38 = vld [vmem:[#allocation2 + $0xb8] sm:$0xff] }
  0x1b   :  { %1306 = vmatpush.bf16.msra.mxu2 %v1101_v3  ;;  %1307 = vmatpush.bf16.msra.mxu3 %v1101_v3 }
  0x1e   :  { %371 = vmatpush.bf16.msra.mxu0 %v1100_v4  ;;  %1308 = vmatpush.bf16.msra.mxu1 %v1100_v4 }
  0x1f   :  { %1309 = vmatpush.bf16.msra.mxu2 %v1100_v4  ;;  %1310 = vmatpush.bf16.msra.mxu3 %v1100_v4 }
  0x22   :  { %372 = vmatpush.bf16.msra.mxu0 %v1099_v5  ;;  %1311 = vmatpush.bf16.msra.mxu1 %v1099_v5 }
  0x23   :  { %1312 = vmatpush.bf16.msra.mxu2 %v1099_v5  ;;  %1313 = vmatpush.bf16.msra.mxu3 %v1099_v5  ;;  %v1096_v5 = vld [vmem:[#allocation2 + $0xf8] sm:$0xff] }
  0x26   :  { %373 = vmatpush.bf16.msra.mxu0 %v1098_v6  ;;  %1314 = vmatpush.bf16.msra.mxu1 %v1098_v6 }
  0x27   :  { %1315 = vmatpush.bf16.msra.mxu2 %v1098_v6  ;;  %1316 = vmatpush.bf16.msra.mxu3 %v1098_v6 }
  0x2a   :  { %374 = vmatpush.bf16.msra.mxu0 %v1097_v7  ;;  %1317 = vmatpush.bf16.msra.mxu1 %v1097_v7 }
  0x2b   :  { %1318 = vmatpush.bf16.msra.mxu2 %v1097_v7  ;;  %1319 = vmatpush.bf16.msra.mxu3 %v1097_v7 }
  0x2d   :  { %375 = vmatmul.bf16.vlgmr.msra.gmra.mxu0 %v1065_v8  ;;  %415 = vmatmul.bf16.vlgmr.msra.gmra.mxu1 %v1073_v9 }
  0x2e   :  { %455 = vmatmul.bf16.vlgmr.msra.gmra.mxu2 %v1081_v12  ;;  %495 = vmatmul.bf16.vlgmr.msra.gmra.mxu3 %v1089_v19 }
  0x3d   :  { %380 = vmatmul.bf16.gmra.mxu0 %v1066_v10  ;;  %420 = vmatmul.bf16.gmra.mxu1 %v1074_v11 }
  0x3e   :  { %460 = vmatmul.bf16.gmra.mxu2 %v1082_v15  ;;  %500 = vmatmul.bf16.gmra.mxu3 %v1090_v23 }
  0x4d   :  { %385 = vmatmul.bf16.gmra.mxu0 %v1067_v13  ;;  %425 = vmatmul.bf16.gmra.mxu1 %v1075_v14 }
  0x4e   :  { %465 = vmatmul.bf16.gmra.mxu2 %v1083_v18  ;;  %505 = vmatmul.bf16.gmra.mxu3 %v1091_v27 }
  0x5d   :  { %390 = vmatmul.bf16.gmra.mxu0 %v1068_v16  ;;  %430 = vmatmul.bf16.gmra.mxu1 %v1076_v17 }
  0x5e   :  { %470 = vmatmul.bf16.gmra.mxu2 %v1084_v22  ;;  %510 = vmatmul.bf16.gmra.mxu3 %v1092_v31 }
  0x6d   :  { %395 = vmatmul.bf16.gmra.mxu0 %v1069_v20  ;;  %435 = vmatmul.bf16.gmra.mxu1 %v1077_v21 }
  0x6e   :  { %475 = vmatmul.bf16.gmra.mxu2 %v1085_v26  ;;  %515 = vmatmul.bf16.gmra.mxu3 %v1093_v35 }
  0x7d   :  { %400 = vmatmul.bf16.gmra.mxu0 %v1070_v24  ;;  %440 = vmatmul.bf16.gmra.mxu1 %v1078_v25 }
  0x7e   :  { %480 = vmatmul.bf16.gmra.mxu2 %v1086_v30  ;;  %520 = vmatmul.bf16.gmra.mxu3 %v1094_v39 }
  0x8d   :  { %405 = vmatmul.bf16.gmra.mxu0 %v1071_v28  ;;  %445 = vmatmul.bf16.gmra.mxu1 %v1079_v29 }
  0x8e   :  { %485 = vmatmul.bf16.gmra.mxu2 %v1087_v34  ;;  %525 = vmatmul.bf16.gmra.mxu3 %v1095_v53 }
  0x9d   :  { %410 = vmatmul.bf16.gmra.mxu0 %v1072_v32  ;;  %450 = vmatmul.bf16.gmra.mxu1 %v1080_v33 }
  0x9e   :  { %490 = vmatmul.bf16.gmra.mxu2 %v1088_v38  ;;  %530 = vmatmul.bf16.gmra.mxu3 %v1096_v5 }
  0xaa   :  { %v376_v36 = vpop.f32.mrf.mxu0  ;;  %v1468_v37 = vpop.f32.mrf.mxu1 }
  0xab   :  { %v733_v40 = vmul.f32 %v376_v36, %v376_v36 }
  0xb1   :  { %v1480_v60 = vpop.f32.mrf.mxu2  ;;  %v1510_v20 = vpop.f32.mrf.mxu3 }
  0xb2   :  { %v378_v41 = vpop.f32.mrf.mxu0  ;;  %v1470_v42 = vpop.f32.mrf.mxu1 }
  0xb3   :  { %v1108_v43 = vpack.c.bf16 %v378_v41, %v376_v36  ;;  %v664_v44 = vadd.f32 %v378_v41, %v376_v36  ;;  %v734_v45 = vmul.f32 %v378_v41, %v378_v41  ;;  %v1148_v46 = vpack.c.bf16 %v1470_v42, %v1468_v37 }
  0xb5   :  { %1109 = vst [vmem:[#allocation7] sm:$0xff] %v1108_v43   ;;  %v797_v47 = vadd.f32 %v734_v45, %v733_v40 }
  0xb6   :  { %1272 = vst [vmem:[#allocation7 + $0x40] sm:$0xff] %v1148_v46  }
  0xb9   :  { %v1486_v2 = vpop.f32.mrf.mxu2  ;;  %v1516_v24 = vpop.f32.mrf.mxu3 }
  0xba   :  { %v381_v48 = vpop.f32.mrf.mxu0  ;;  %v1474_v49 = vpop.f32.mrf.mxu1  ;;  %v1188_v3 = vpack.c.bf16 %v1486_v2, %v1480_v60  ;;  %v1228_v26 = vpack.c.bf16 %v1516_v24, %v1510_v20 }
  0xbb   :  { %v665_v50 = vadd.f32 %v664_v44, %v381_v48  ;;  %v735_v51 = vmul.f32 %v381_v48, %v381_v48 }
  0xbc   :  { %1280 = vst [vmem:[#allocation7 + $0x80] sm:$0xff] %v1188_v3  }
  0xbd   :  { %v798_v52 = vadd.f32 %v797_v47, %v735_v51  ;;  %1288 = vst [vmem:[#allocation7 + $0xc0] sm:$0xff] %v1228_v26  }
  0xc1   :  { %v1496_v10 = vpop.f32.mrf.mxu2  ;;  %v1528_v32 = vpop.f32.mrf.mxu3 }
  0xc2   :  { %v383_v54 = vpop.f32.mrf.mxu0  ;;  %v1476_v55 = vpop.f32.mrf.mxu1 }
  0xc3   :  { %v1113_v56 = vpack.c.bf16 %v383_v54, %v381_v48  ;;  %v666_v57 = vadd.f32 %v665_v50, %v383_v54  ;;  %v736_v58 = vmul.f32 %v383_v54, %v383_v54  ;;  %v1153_v59 = vpack.c.bf16 %v1476_v55, %v1474_v49 }
  0xc5   :  { %1265 = vst [vmem:[#allocation7 + $0x8] sm:$0xff] %v1113_v56   ;;  %v799_v61 = vadd.f32 %v798_v52, %v736_v58 }
  0xc6   :  { %1273 = vst [vmem:[#allocation7 + $0x48] sm:$0xff] %v1153_v59  }
  0xc9   :  { %v1500_v13 = vpop.f32.mrf.mxu2  ;;  %v1534_v36 = vpop.f32.mrf.mxu3 }
  0xca   :  { %v386_v62 = vpop.f32.mrf.mxu0  ;;  %v1482_v63 = vpop.f32.mrf.mxu1  ;;  %v1193_v14 = vpack.c.bf16 %v1500_v13, %v1496_v10  ;;  %v1233_v39 = vpack.c.bf16 %v1534_v36, %v1528_v32 }
  0xcb   :  { %v1484_v0 = vadd.f32 %v666_v57, %v386_v62  ;;  %v737_v1 = vmul.f32 %v386_v62, %v386_v62 }
  0xcc   :  { %1281 = vst [vmem:[#allocation7 + $0x88] sm:$0xff] %v1193_v14  }
  0xcd   :  { %v1490_v4 = vadd.f32 %v799_v61, %v737_v1  ;;  %1289 = vst [vmem:[#allocation7 + $0xc8] sm:$0xff] %v1233_v39  }
  0xd1   :  { %v1508_v19 = vpop.f32.mrf.mxu2  ;;  %v1546_v46 = vpop.f32.mrf.mxu3 }
  0xd2   :  { %v388_v6 = vpop.f32.mrf.mxu0  ;;  %v1492_v7 = vpop.f32.mrf.mxu1 }
  0xd3   :  { %v1118_v8 = vpack.c.bf16 %v388_v6, %v386_v62  ;;  %v1158_v9 = vpack.c.bf16 %v1492_v7, %v1482_v63  ;;  %v738_v52 = vmul.f32 %v388_v6, %v388_v6  ;;  %v668_v57 = vadd.f32 %v1484_v0, %v388_v6 }
  0xd5   :  { %1266 = vst [vmem:[#allocation7 + $0x10] sm:$0xff] %v1118_v8   ;;  %v801_v58 = vadd.f32 %v1490_v4, %v738_v52 }
  0xd6   :  { %1274 = vst [vmem:[#allocation7 + $0x50] sm:$0xff] %v1158_v9  }
  0xd9   :  { %v1514_v23 = vpop.f32.mrf.mxu2  ;;  %v1552_v51 = vpop.f32.mrf.mxu3 }
  0xda   :  { %v391_v11 = vpop.f32.mrf.mxu0  ;;  %v1498_v12 = vpop.f32.mrf.mxu1  ;;  %v1198_v25 = vpack.c.bf16 %v1514_v23, %v1508_v19  ;;  %v1238_v54 = vpack.c.bf16 %v1552_v51, %v1546_v46 }
  0xdb   :  { %v739_v56 = vmul.f32 %v391_v11, %v391_v11  ;;  %v669_v61 = vadd.f32 %v668_v57, %v391_v11 }
  0xdc   :  { %1282 = vst [vmem:[#allocation7 + $0x90] sm:$0xff] %v1198_v25  }
  0xdd   :  { %1290 = vst [vmem:[#allocation7 + $0xd0] sm:$0xff] %v1238_v54   ;;  %v802_v62 = vadd.f32 %v801_v58, %v739_v56 }
  0xe1   :  { %v1526_v31 = vpop.f32.mrf.mxu2 }
  0xe2   :  { %v393_v15 = vpop.f32.mrf.mxu0  ;;  %v1504_v16 = vpop.f32.mrf.mxu1 }
  0xe3   :  { %v1123_v17 = vpack.c.bf16 %v393_v15, %v391_v11  ;;  %v1163_v18 = vpack.c.bf16 %v1504_v16, %v1498_v12  ;;  %v740_v59 = vmul.f32 %v393_v15, %v393_v15  ;;  %v670_v8 = vadd.f32 %v669_v61, %v393_v15 }
  0xe5   :  { %1267 = vst [vmem:[#allocation7 + $0x18] sm:$0xff] %v1123_v17   ;;  %v803_v0 = vadd.f32 %v802_v62, %v740_v59 }
  0xe6   :  { %1275 = vst [vmem:[#allocation7 + $0x58] sm:$0xff] %v1163_v18   ;;  %v1566_v18 = vpop.f32.mrf.mxu3 }
  0xe9   :  { %v1532_v35 = vpop.f32.mrf.mxu2 }
  0xea   :  { %v396_v21 = vpop.f32.mrf.mxu0  ;;  %v1512_v22 = vpop.f32.mrf.mxu1  ;;  %v1203_v38 = vpack.c.bf16 %v1532_v35, %v1526_v31 }
  0xeb   :  { %v741_v1 = vmul.f32 %v396_v21, %v396_v21  ;;  %v671_v25 = vadd.f32 %v670_v8, %v396_v21 }
  0xec   :  { %1283 = vst [vmem:[#allocation7 + $0x98] sm:$0xff] %v1203_v38  }
  0xed   :  { %v804_v4 = vadd.f32 %v803_v0, %v741_v1 }
  0xee   :  { %v1572_v54 = vpop.f32.mrf.mxu3 }
  0xf1   :  { %v1544_v45 = vpop.f32.mrf.mxu2 }
  0xf2   :  { %v398_v27 = vpop.f32.mrf.mxu0  ;;  %v1522_v28 = vpop.f32.mrf.mxu1 }
  0xf3   :  { %v1128_v29 = vpack.c.bf16 %v398_v27, %v396_v21  ;;  %v1168_v30 = vpack.c.bf16 %v1522_v28, %v1512_v22  ;;  %v742_v6 = vmul.f32 %v398_v27, %v398_v27  ;;  %v672_v26 = vadd.f32 %v671_v25, %v398_v27 }
  0xf4   :  { %v1243_v27 = vpack.c.bf16 %v1572_v54, %v1566_v18 }
  0xf5   :  { %1268 = vst [vmem:[#allocation7 + $0x20] sm:$0xff] %v1128_v29   ;;  %v805_v29 = vadd.f32 %v804_v4, %v742_v6 }
  0xf6   :  { %1276 = vst [vmem:[#allocation7 + $0x60] sm:$0xff] %v1168_v30  }
  0xf7   :  { %1291 = vst [vmem:[#allocation7 + $0xd8] sm:$0xff] %v1243_v27  }
  0xf9   :  { %v1550_v50 = vpop.f32.mrf.mxu2 }
  0xfa   :  { %v401_v33 = vpop.f32.mrf.mxu0  ;;  %v1530_v34 = vpop.f32.mrf.mxu1  ;;  %v1208_v53 = vpack.c.bf16 %v1550_v50, %v1544_v45 }
  0xfb   :  { %v743_v11 = vmul.f32 %v401_v33, %v401_v33  ;;  %v673_v38 = vadd.f32 %v672_v26, %v401_v33 }
  0xfc   :  { %1284 = vst [vmem:[#allocation7 + $0xa0] sm:$0xff] %v1208_v53  }
  0xfd   :  { %v806_v15 = vadd.f32 %v805_v29, %v743_v11  ;;  %v750_v29 = vmul.f32 %v1470_v42, %v1470_v42 }
 0x101   :  { %v1564_v17 = vpop.f32.mrf.mxu2 }
 0x102   :  { %v403_v40 = vpop.f32.mrf.mxu0  ;;  %v1540_v41 = vpop.f32.mrf.mxu1 }
 0x103   :  { %v1133_v43 = vpack.c.bf16 %v403_v40, %v401_v33  ;;  %v1173_v44 = vpack.c.bf16 %v1540_v41, %v1530_v34  ;;  %v744_v30 = vmul.f32 %v403_v40, %v403_v40  ;;  %v674_v52 = vadd.f32 %v673_v38, %v403_v40 }
 0x105   :  { %1269 = vst [vmem:[#allocation7 + $0x28] sm:$0xff] %v1133_v43   ;;  %v807_v56 = vadd.f32 %v806_v15, %v744_v30  ;;  %v751_v15 = vmul.f32 %v1474_v49, %v1474_v49 }
 0x106   :  { %1277 = vst [vmem:[#allocation7 + $0x68] sm:$0xff] %v1173_v44  }
 0x109   :  { %v1570_v53 = vpop.f32.mrf.mxu2 }
 0x10a   :  { %v406_v47 = vpop.f32.mrf.mxu0  ;;  %v1548_v48 = vpop.f32.mrf.mxu1  ;;  %v1213_v57 = vpack.c.bf16 %v1570_v53, %v1564_v17 }
 0x10b   :  { %v745_v39 = vmul.f32 %v406_v47, %v406_v47  ;;  %v675_v58 = vadd.f32 %v674_v52, %v406_v47  ;;  %v752_v52 = vmul.f32 %v1476_v55, %v1476_v55 }
 0x10c   :  { %1285 = vst [vmem:[#allocation7 + $0xa8] sm:$0xff] %v1213_v57  }
 0x10d   :  { %v808_v33 = vadd.f32 %v807_v56, %v745_v39 }
 0x111   :  { %v1582_v4 = vpop.f32.mrf.mxu2 }
 0x112   :  { %v408_v3 = vpop.f32.mrf.mxu0  ;;  %v1560_v5 = vpop.f32.mrf.mxu1 }
 0x113   :  { %v1138_v9 = vpack.c.bf16 %v408_v3, %v406_v47  ;;  %v1178_v14 = vpack.c.bf16 %v1560_v5, %v1548_v48  ;;  %v746_v21 = vmul.f32 %v408_v3, %v408_v3  ;;  %v676_v61 = vadd.f32 %v675_v58, %v408_v3  ;;  %v1584_v47 = vpop.f32.mrf.mxu3 }
 0x114   :  { %v749_v3 = vmul.f32 %v1468_v37, %v1468_v37 }
 0x115   :  { %1270 = vst [vmem:[#allocation7 + $0x30] sm:$0xff] %v1138_v9   ;;  %v809_v62 = vadd.f32 %v808_v33, %v746_v21 }
 0x116   :  { %1278 = vst [vmem:[#allocation7 + $0x70] sm:$0xff] %v1178_v14  }
 0x119   :  { %v1598_v21 = vpop.f32.mrf.mxu2 }
 0x11a   :  { %v411_v43 = vpop.f32.mrf.mxu0  ;;  %v1568_v44 = vpop.f32.mrf.mxu1 }
 0x11b   :  { %v747_v59 = vmul.f32 %v411_v43, %v411_v43  ;;  %v677_v40 = vadd.f32 %v676_v61, %v411_v43  ;;  %v1600_v57 = vpop.f32.mrf.mxu3 }
 0x11c   :  { %v1248_v27 = vpack.c.bf16 %v1600_v57, %v1584_v47 }
 0x11d   :  { %v810_v1 = vadd.f32 %v809_v62, %v747_v59  ;;  %v755_v62 = vmul.f32 %v1498_v12, %v1498_v12 }
 0x11e   :  { %1292 = vst [vmem:[#allocation7 + $0xe0] sm:$0xff] %v1248_v27   ;;  %v762_v27 = vmul.f32 %v1560_v5, %v1560_v5 }
 0x122   :  { %v413_v8 = vpop.f32.mrf.mxu0  ;;  %v1578_v9 = vpop.f32.mrf.mxu1 }
 0x123   :  { %v1143_v14 = vpack.c.bf16 %v413_v8, %v411_v43  ;;  %v678_v0 = vadd.f32 %v677_v40, %v413_v8  ;;  %v748_v6 = vmul.f32 %v413_v8, %v413_v8  ;;  %v1183_v25 = vpack.c.bf16 %v1578_v9, %v1568_v44 }
 0x124   :  { %v756_v8 = vmul.f32 %v1504_v16, %v1504_v16 }
 0x125   :  { %1271 = vst [vmem:[#allocation7 + $0x38] sm:$0xff] %v1143_v14   ;;  %v679_v11 = vadd.f32 %v678_v0, %v1468_v37  ;;  %v811_v26 = vadd.f32 %v810_v1, %v748_v6  ;;  %v1618_v0 = vpop.f32.mrf.mxu2  ;;  %v1620_v6 = vpop.f32.mrf.mxu3 }
 0x126   :  { %1279 = vst [vmem:[#allocation7 + $0x78] sm:$0xff] %v1183_v25  }
 0x127   :  { %v680_v30 = vadd.f32 %v679_v11, %v1470_v42  ;;  %v812_v38 = vadd.f32 %v811_v26, %v749_v3  ;;  %v1218_v42 = vpack.c.bf16 %v1598_v21, %v1582_v4  ;;  %v758_v11 = vmul.f32 %v1522_v28, %v1522_v28 }
 0x129   :  { %v681_v39 = vadd.f32 %v680_v30, %v1474_v49  ;;  %v813_v43 = vadd.f32 %v812_v38, %v750_v29  ;;  %v753_v49 = vmul.f32 %v1482_v63, %v1482_v63  ;;  %1286 = vst [vmem:[#allocation7 + $0xb0] sm:$0xff] %v1218_v42   ;;  %v760_v38 = vmul.f32 %v1540_v41, %v1540_v41 }
 0x12b   :  { %v682_v56 = vadd.f32 %v681_v39, %v1476_v55  ;;  %v814_v37 = vadd.f32 %v813_v43, %v751_v15  ;;  %v754_v55 = vmul.f32 %v1492_v7, %v1492_v7 }
 0x12d   :  { %v683_v58 = vadd.f32 %v682_v56, %v1482_v63  ;;  %v815_v33 = vadd.f32 %v814_v37, %v752_v52  ;;  %v1636_v43 = vpop.f32.mrf.mxu3 }
 0x12e   :  { %v1253_v52 = vpack.c.bf16 %v1636_v43, %v1620_v6 }
 0x12f   :  { %v684_v59 = vadd.f32 %v683_v58, %v1492_v7  ;;  %v816_v61 = vadd.f32 %v815_v33, %v753_v49  ;;  %v757_v7 = vmul.f32 %v1512_v22, %v1512_v22  ;;  %v763_v33 = vmul.f32 %v1568_v44, %v1568_v44 }
 0x130   :  { %1293 = vst [vmem:[#allocation7 + $0xe8] sm:$0xff] %v1253_v52   ;;  %v773_v52 = vmul.f32 %v1544_v45, %v1544_v45 }
 0x131   :  { %v817_v40 = vadd.f32 %v816_v61, %v754_v55  ;;  %v685_v1 = vadd.f32 %v684_v59, %v1498_v12 }
 0x133   :  { %v686_v63 = vadd.f32 %v685_v1, %v1504_v16  ;;  %v818_v14 = vadd.f32 %v817_v40, %v755_v62  ;;  %v759_v16 = vmul.f32 %v1530_v34, %v1530_v34  ;;  %v765_v62 = vmul.f32 %v1480_v60, %v1480_v60 }
 0x134   :  { %v766_v1 = vmul.f32 %v1486_v2, %v1486_v2 }
 0x135   :  { %v687_v25 = vadd.f32 %v686_v63, %v1512_v22  ;;  %v819_v3 = vadd.f32 %v818_v14, %v756_v8  ;;  %v1634_v22 = vpop.f32.mrf.mxu2  ;;  %v1654_v61 = vpop.f32.mrf.mxu3  ;;  %v767_v63 = vmul.f32 %v1496_v10, %v1496_v10 }
 0x137   :  { %v688_v12 = vadd.f32 %v687_v25, %v1522_v28  ;;  %v820_v26 = vadd.f32 %v819_v3, %v757_v7  ;;  %v1223_v28 = vpack.c.bf16 %v1634_v22, %v1618_v0  ;;  %v768_v7 = vmul.f32 %v1500_v13, %v1500_v13 }
 0x139   :  { %v689_v29 = vadd.f32 %v688_v12, %v1530_v34  ;;  %v821_v30 = vadd.f32 %v820_v26, %v758_v11  ;;  %v761_v34 = vmul.f32 %v1548_v48, %v1548_v48  ;;  %1287 = vst [vmem:[#allocation7 + $0xb8] sm:$0xff] %v1223_v28  }
 0x13b   :  { %v690_v15 = vadd.f32 %v689_v29, %v1540_v41  ;;  %v822_v39 = vadd.f32 %v821_v30, %v759_v16 }
 0x13d   :  { %v691_v56 = vadd.f32 %v690_v15, %v1548_v48  ;;  %v823_v37 = vadd.f32 %v822_v39, %v760_v38  ;;  %v764_v48 = vmul.f32 %v1578_v9, %v1578_v9  ;;  %v772_v15 = vmul.f32 %v1532_v35, %v1532_v35 }
 0x13f   :  { %v824_v42 = vadd.f32 %v823_v37, %v761_v34  ;;  %v692_v41 = vadd.f32 %v691_v56, %v1560_v5  ;;  %v774_v34 = vmul.f32 %v1550_v50, %v1550_v50 }
 0x141   :  { %v825_v49 = vadd.f32 %v824_v42, %v762_v27  ;;  %v693_v58 = vadd.f32 %v692_v41, %v1568_v44  ;;  %v775_v42 = vmul.f32 %v1564_v17, %v1564_v17  ;;  %v776_v27 = vmul.f32 %v1570_v53, %v1570_v53 }
 0x143   :  { %v826_v55 = vadd.f32 %v825_v49, %v763_v33  ;;  %v694_v59 = vadd.f32 %v693_v58, %v1578_v9 }
 0x145   :  { %v695_v5 = vadd.f32 %v694_v59, %v1480_v60  ;;  %v827_v40 = vadd.f32 %v826_v55, %v764_v48  ;;  %v1668_v60 = vpop.f32.mrf.mxu3  ;;  %v777_v55 = vmul.f32 %v1582_v4, %v1582_v4 }
 0x146   :  { %v1258_v11 = vpack.c.bf16 %v1668_v60, %v1654_v61 }
 0x147   :  { %v696_v8 = vadd.f32 %v695_v5, %v1486_v2  ;;  %v828_v44 = vadd.f32 %v827_v40, %v765_v62  ;;  %v769_v2 = vmul.f32 %v1508_v19, %v1508_v19  ;;  %v779_v40 = vmul.f32 %v1618_v0, %v1618_v0 }
 0x148   :  { %1294 = vst [vmem:[#allocation7 + $0xf0] sm:$0xff] %v1258_v11  }
 0x149   :  { %v697_v14 = vadd.f32 %v696_v8, %v1496_v10  ;;  %v829_v9 = vadd.f32 %v828_v44, %v766_v1  ;;  %v770_v10 = vmul.f32 %v1514_v23, %v1514_v23  ;;  %v780_v8 = vmul.f32 %v1634_v22, %v1634_v22 }
 0x14a   :  { %v781_v44 = vmul.f32 %v1510_v20, %v1510_v20 }
 0x14b   :  { %v698_v25 = vadd.f32 %v697_v14, %v1500_v13  ;;  %v830_v3 = vadd.f32 %v829_v9, %v767_v63  ;;  %v771_v13 = vmul.f32 %v1526_v31, %v1526_v31  ;;  %v782_v14 = vmul.f32 %v1516_v24, %v1516_v24 }
 0x14d   :  { %v699_v12 = vadd.f32 %v698_v25, %v1508_v19  ;;  %v831_v26 = vadd.f32 %v830_v3, %v768_v7  ;;  %v1684_v28 = vpop.f32.mrf.mxu3 }
 0x14f   :  { %v700_v16 = vadd.f32 %v699_v12, %v1514_v23  ;;  %v832_v29 = vadd.f32 %v831_v26, %v769_v2 }
 0x151   :  { %v833_v30 = vadd.f32 %v832_v29, %v770_v10  ;;  %v701_v38 = vadd.f32 %v700_v16, %v1526_v31 }
 0x153   :  { %v702_v39 = vadd.f32 %v701_v38, %v1532_v35  ;;  %v834_v19 = vadd.f32 %v833_v30, %v771_v13 }
 0x155   :  { %v703_v23 = vadd.f32 %v702_v39, %v1544_v45  ;;  %v835_v56 = vadd.f32 %v834_v19, %v772_v15 }
 0x157   :  { %v704_v37 = vadd.f32 %v703_v23, %v1550_v50  ;;  %v836_v31 = vadd.f32 %v835_v56, %v773_v52  ;;  %v1701_v50 = vpop.f32.mrf.mxu3 }
 0x158   :  { %v1263_v58 = vpack.c.bf16 %v1701_v50, %v1684_v28 }
 0x159   :  { %v705_v35 = vadd.f32 %v704_v37, %v1564_v17  ;;  %v837_v41 = vadd.f32 %v836_v31, %v774_v34  ;;  %v792_v34 = vmul.f32 %v1636_v43, %v1636_v43 }
 0x15a   :  { %1295 = vst [vmem:[#allocation7 + $0xf8] sm:$0xff] %v1263_v58   ;;  %v796_v58 = vmul.f32 %v1701_v50, %v1701_v50 }
 0x15b   :  { %v706_v45 = vadd.f32 %v705_v35, %v1570_v53  ;;  %v838_v49 = vadd.f32 %v837_v41, %v775_v42  ;;  %v778_v53 = vmul.f32 %v1598_v21, %v1598_v21  ;;  %881 = dma.vmem_to_hbm [thread:$0]  %s874_s1, 4096, %s876_s26, [#allocation4], %s1431_s20, %s1431_s20, %s1432_s21   ;;  %v793_v42 = vmul.f32 %v1654_v61, %v1654_v61 }
 0x15c   :  { %v794_v41 = vmul.f32 %v1668_v60, %v1668_v60 }
 0x15d   :  { %v839_v17 = vadd.f32 %v838_v49, %v776_v27  ;;  %v707_v33 = vadd.f32 %v706_v45, %v1582_v4  ;;  %v795_v27 = vmul.f32 %v1684_v28, %v1684_v28 }
 0x15f   :  { %v840_v59 = vadd.f32 %v839_v17, %v777_v55  ;;  %v708_v48 = vadd.f32 %v707_v33, %v1598_v21 }
 0x161   :  { %v841_v62 = vadd.f32 %v840_v59, %v778_v53  ;;  %v709_v5 = vadd.f32 %v708_v48, %v1618_v0  ;;  %v783_v0 = vmul.f32 %v1528_v32, %v1528_v32 }
 0x163   :  { %v842_v1 = vadd.f32 %v841_v62, %v779_v40  ;;  %v710_v4 = vadd.f32 %v709_v5, %v1634_v22  ;;  %v784_v22 = vmul.f32 %v1534_v36, %v1534_v36 }
 0x165   :  { %v711_v21 = vadd.f32 %v710_v4, %v1510_v20  ;;  %v843_v63 = vadd.f32 %v842_v1, %v780_v8  ;;  %v785_v20 = vmul.f32 %v1546_v46, %v1546_v46 }
 0x167   :  { %v712_v9 = vadd.f32 %v711_v21, %v1516_v24  ;;  %v844_v7 = vadd.f32 %v843_v63, %v781_v44  ;;  %v786_v24 = vmul.f32 %v1552_v51, %v1552_v51 }
 0x169   :  { %v713_v25 = vadd.f32 %v712_v9, %v1528_v32  ;;  %v845_v3 = vadd.f32 %v844_v7, %v782_v14  ;;  %v787_v32 = vmul.f32 %v1566_v18, %v1566_v18 }
 0x16b   :  { %v714_v11 = vadd.f32 %v713_v25, %v1534_v36  ;;  %v846_v2 = vadd.f32 %v845_v3, %v783_v0  ;;  %v788_v36 = vmul.f32 %v1572_v54, %v1572_v54 }
 0x16d   :  { %v715_v12 = vadd.f32 %v714_v11, %v1546_v46  ;;  %v847_v26 = vadd.f32 %v846_v2, %v784_v22  ;;  %v789_v46 = vmul.f32 %v1584_v47, %v1584_v47 }
 0x16f   :  { %v716_v10 = vadd.f32 %v715_v12, %v1552_v51  ;;  %v848_v16 = vadd.f32 %v847_v26, %v785_v20  ;;  %v790_v51 = vmul.f32 %v1600_v57, %v1600_v57 }
 0x171   :  { %v849_v29 = vadd.f32 %v848_v16, %v786_v24  ;;  %v717_v13 = vadd.f32 %v716_v10, %v1566_v18  ;;  %v791_v18 = vmul.f32 %v1620_v6, %v1620_v6 }
 0x173   :  { %v718_v30 = vadd.f32 %v717_v13, %v1572_v54  ;;  %v850_v38 = vadd.f32 %v849_v29, %v787_v32 }
 0x175   :  { %v719_v15 = vadd.f32 %v718_v30, %v1584_v47  ;;  %v851_v39 = vadd.f32 %v850_v38, %v788_v36 }
 0x177   :  { %v720_v19 = vadd.f32 %v719_v15, %v1600_v57  ;;  %v852_v52 = vadd.f32 %v851_v39, %v789_v46 }
 0x179   :  { %v721_v23 = vadd.f32 %v720_v19, %v1620_v6  ;;  %v853_v56 = vadd.f32 %v852_v52, %v790_v51 }
 0x17b   :  { %v722_v54 = vadd.f32 %v721_v23, %v1636_v43  ;;  %v854_v37 = vadd.f32 %v853_v56, %v791_v18 }
 0x17d   :  { %v855_v47 = vadd.f32 %v854_v37, %v792_v34  ;;  %v723_v31 = vadd.f32 %v722_v54, %v1654_v61 }
 0x17f   :  { %v856_v57 = vadd.f32 %v855_v47, %v793_v42  ;;  %v724_v35 = vadd.f32 %v723_v31, %v1668_v60 }
 0x181   :  { %v857_v6 = vadd.f32 %v856_v57, %v794_v41  ;;  %v725_v45 = vadd.f32 %v724_v35, %v1684_v28 }
 0x183   :  { %v858_v43 = vadd.f32 %v857_v6, %v795_v27  ;;  %v726_v49 = vadd.f32 %v725_v45, %v1701_v50 }
 0x185   :  { %v727_v17 = vrot.slane %v726_v49, 4  ;;  %v859_v61 = vadd.f32 %v858_v43, %v796_v58 }
 0x187   :  { %v728_v33 = vadd.f32 %v727_v17, %v726_v49  ;;  %v860_v55 = vrot.slane %v859_v61, 4 }
 0x189   :  { %v729_v59 = vrot.slane %v728_v33, 2  ;;  %v861_v48 = vadd.f32 %v860_v55, %v859_v61 }
 0x18b   :  { %v730_v53 = vadd.f32 %v729_v59, %v728_v33  ;;  %v862_v60 = vrot.slane %v861_v48, 2 }
 0x18d   :  { %v731_v62 = vrot.slane %v730_v53, 1  ;;  %v863_v5 = vadd.f32 %v862_v60, %v861_v48 }
 0x18f   :  { %v864_v40 = vrot.slane %v863_v5, 1  ;;  %v732_v28 = vadd.f32 %v731_v62, %v730_v53 }
 0x191   :  { %v865_v50 = vadd.f32 %v864_v40, %v863_v5 }
 0x193   :  { %v867_v1 = vsel %vm866_vm0, %v732_v28, %v865_v50 }
 0x194   :  { %868 = vst [vmem:[#allocation8] sm:$0x3] %v867_v1 }
 0x195   :  { %892 = dma.vmem_to_hbm [thread:$0]  %s888_s27, 32, %s890_s30, [#allocation9]  }
 0x196   :  { %1426 = dma.done.wait [#allocation4], 4096  }
 0x197   :  { %1427 = vsyncadd [#allocation4], 4294963200 }
 0x198   :  { %1428 = dma.done.wait [#allocation9], 32  }
 0x199   :  { %1429 = vsyncadd [#allocation9], 4294967264 }
 0x19a   :  { %901 = vsyncpa [#allocation3], 1 }
 0x19b   :  { %902 = vsyncpa [#allocation6], 1 }
 0x19c   :  { %903 = vsyncpa [#allocation4], 1 }
 0x19d   :  { %904 = vsyncpa [#allocation9], 1 }

</bundles_post_ra>
